<compile_context>
chip_gen: v7x
topology: tpu7x:2x2x1
jax: 0.10.0
libtpu: 0.0.40
codegen_flags: <defaults>
</compile_context>

<pallas_src>
import jax
import jax.numpy as jnp
from jax import lax
from jax.experimental import pallas as pl
from jax.experimental.pallas import tpu as pltpu


def _round_up(x, m):
    return ((x + m - 1) // m) * m


def _pick_batch_tile(batch, input_dim, vmem_budget_bytes=8 * 1024 * 1024):
    """Batch tile: multiple of 128 (lane-dense output), bounded by VMEM budget."""
    tb = 512
    # double-buffered bf16 input tile must fit the budget (conservative for v7x)
    while tb > 128 and 2 * tb * input_dim * 2 > vmem_budget_bytes:
        tb //= 2
    return min(tb, _round_up(batch, 128))


def _mlp_value_kernel(x_ref, w1_ref, b1_ref, w2_ref, b2_ref, w3_ref, b3_ref, o_ref):
    # x_ref : (TB, in) bf16     w1_ref: (H1, in) bf16    b1_ref: (H1, 1) f32
    # w2_ref: (H2, H1) bf16     b2_ref: (H2, 1) f32
    # w3_ref: (H2, 1)  f32      b3_ref: (1, 1)  f32  (SMEM scalar)
    # o_ref : (1, TB)  f32      (batch along lanes -> lane-dense store)

    # Layer 1: h1[h, b] = sum_i w1[h, i] * x[b, i]   (A @ B^T on the MXU)
    h1 = lax.dot_general(
        w1_ref[...], x_ref[...],
        dimension_numbers=(((1,), (1,)), ((), ())),
        preferred_element_type=jnp.float32)
    h1 = jnp.maximum(h1 + b1_ref[...], 0.0)                    # (H1, TB) f32

    # Layer 2: (H2, H1) @ (H1, TB)
    h2 = jnp.dot(w2_ref[...], h1.astype(w2_ref.dtype),
                 preferred_element_type=jnp.float32)
    h2 = jnp.maximum(h2 + b2_ref[...], 0.0)                    # (H2, TB) f32

    # Output layer (H2 -> 1): VPU multiply + cross-sublane reduce, f32.
    v = jnp.sum(h2 * w3_ref[...], axis=0, keepdims=True) + b3_ref[0, 0]  # (1, TB)
    o_ref[...] = v.astype(o_ref.dtype)


def state_value_function(states, params, *, batch_tile=None):
    """Forward pass of StateValueFunction.

    states: [B, input_dim] float32 (or bfloat16)
    params: dict in PyTorch layout:
        w1 [H1, input_dim], b1 [H1], w2 [H2, H1], b2 [H2], w3 [1, H2], b3 [1]
    returns: [B, 1] float32
    """
    B, input_dim = states.shape
    h1_dim = params["w1"].shape[0]
    h2_dim = params["w2"].shape[0]

    # Prepare operands: bf16 MXU inputs, f32 biases as broadcastable columns.
    w1 = params["w1"].astype(jnp.bfloat16)                         # (H1, in)
    b1 = params["b1"].astype(jnp.float32).reshape(h1_dim, 1)       # (H1, 1)
    w2 = params["w2"].astype(jnp.bfloat16)                         # (H2, H1)
    b2 = params["b2"].astype(jnp.float32).reshape(h2_dim, 1)       # (H2, 1)
    w3 = params["w3"].astype(jnp.float32).reshape(h2_dim, 1)       # (H2, 1)
    b3 = params["b3"].astype(jnp.float32).reshape(1, 1)            # (1, 1)

    tb = batch_tile or _pick_batch_tile(B, input_dim)
    b_pad = _round_up(B, tb)
    num_tiles = b_pad // tb

    x = states.astype(jnp.bfloat16)
    if b_pad != B:
        x = jnp.pad(x, ((0, b_pad - B), (0, 0)))

    out_row = pl.pallas_call(
        _mlp_value_kernel,
        out_shape=jax.ShapeDtypeStruct((1, b_pad), jnp.float32),
        grid=(num_tiles,),
        in_specs=[
            pl.BlockSpec((tb, input_dim), lambda i: (i, 0)),       # states tile
            pl.BlockSpec(w1.shape, lambda i: (0, 0)),              # resident
            pl.BlockSpec(b1.shape, lambda i: (0, 0)),
            pl.BlockSpec(w2.shape, lambda i: (0, 0)),
            pl.BlockSpec(b2.shape, lambda i: (0, 0)),
            pl.BlockSpec(w3.shape, lambda i: (0, 0)),
            pl.BlockSpec(memory_space=pltpu.MemorySpace.SMEM),     # b3 scalar
        ],
        out_specs=pl.BlockSpec((1, tb), lambda i: (0, i)),         # lane-dense
        compiler_params=pltpu.CompilerParams(
            dimension_semantics=("parallel",),                     # megacore on v7x
        ),
    )(x, w1, b1, w2, b2, w3, b3)

    return out_row.reshape(b_pad, 1)[:B]


def he_init_params(key, input_dim, hidden_units=(64, 64), output_dim=1):
    """He (kaiming-normal, fan_in) init in PyTorch [out, in] layout, zero bias."""
    dims = (input_dim,) + tuple(hidden_units) + (output_dim,)
    params = {}
    keys = jax.random.split(key, len(dims) - 1)
    for idx, (fan_in, fan_out) in enumerate(zip(dims[:-1], dims[1:]), start=1):
        std = jnp.sqrt(2.0 / fan_in)  # kaiming normal, ReLU gain
        params[f"w{idx}"] = std * jax.random.normal(
            keys[idx - 1], (fan_out, fan_in), jnp.float32)
        params[f"b{idx}"] = jnp.zeros((fan_out,), jnp.float32)
    return params


if __name__ == "__main__":
    key = jax.random.PRNGKey(0)
    k_params, k_states = jax.random.split(key)

    batch = 16
    input_dim = 64

    params = he_init_params(k_params, input_dim, hidden_units=(64, 64), output_dim=1)
    states = jax.random.normal(k_states, (batch, input_dim), jnp.float32)

    values = state_value_function(states, params)
    jax.block_until_ready(values)

    # Pure-JAX reference with the same bf16-matmul / f32-accumulate recipe.
    xb = states.astype(jnp.bfloat16)
    w1b = params["w1"].astype(jnp.bfloat16)
    w2b = params["w2"].astype(jnp.bfloat16)
    h1 = jnp.maximum(
        jnp.dot(xb, w1b.T, preferred_element_type=jnp.float32) + params["b1"], 0.0)
    h2 = jnp.maximum(
        jnp.dot(h1.astype(jnp.bfloat16), w2b.T,
                preferred_element_type=jnp.float32) + params["b2"], 0.0)
    ref = h2 @ params["w3"].T + params["b3"]

    assert values.shape == (batch, 1)
    assert jnp.allclose(values, ref, atol=1e-3, rtol=1e-3)

    print("KERNEL_OK")
</pallas_src>

<mosaic_0001>
module attributes {stable_mosaic.version = 11 : i64} {
  func.func @_mlp_value_kernel(%arg0: i32, %arg1: memref<128x64xbf16, #tpu.memory_space<vmem>>, %arg2: memref<64x64xbf16, #tpu.memory_space<vmem>>, %arg3: memref<64x1xf32, #tpu.memory_space<vmem>>, %arg4: memref<64x64xbf16, #tpu.memory_space<vmem>>, %arg5: memref<64x1xf32, #tpu.memory_space<vmem>>, %arg6: memref<64x1xf32, #tpu.memory_space<vmem>>, %arg7: memref<1x1xf32, #tpu.memory_space<smem>>, %arg8: memref<1x128xf32, #tpu.memory_space<vmem>>) attributes {dimension_semantics = [#tpu.dimension_semantics<parallel>], iteration_bounds = array<i64: 1>, scalar_prefetch = 0 : i64, scratch_operands = 0 : i64, tpu.core_type = #tpu.core_type<tc>, window_params = [{transform_indices = @transform_0, window_bounds = array<i64: 128, 64>}, {pipeline_mode = #tpu.pipeline_mode<synchronous>, transform_indices = @transform_1, window_bounds = array<i64: 64, 64>}, {pipeline_mode = #tpu.pipeline_mode<synchronous>, transform_indices = @transform_2, window_bounds = array<i64: 64, 1>}, {pipeline_mode = #tpu.pipeline_mode<synchronous>, transform_indices = @transform_3, window_bounds = array<i64: 64, 64>}, {pipeline_mode = #tpu.pipeline_mode<synchronous>, transform_indices = @transform_4, window_bounds = array<i64: 64, 1>}, {pipeline_mode = #tpu.pipeline_mode<synchronous>, transform_indices = @transform_5, window_bounds = array<i64: 64, 1>}, {transform_indices = @transform_6, window_bounds = array<i64: 1, 1>}, {transform_indices = @transform_7, window_bounds = array<i64: 1, 128>}]} {
    %c0 = arith.constant 0 : index
    %c0_0 = arith.constant 0 : index
    %0 = vector.load %arg2[%c0, %c0_0] : memref<64x64xbf16, #tpu.memory_space<vmem>>, vector<64x64xbf16>
    %c0_1 = arith.constant 0 : index
    %c0_2 = arith.constant 0 : index
    %1 = vector.load %arg1[%c0_1, %c0_2] : memref<128x64xbf16, #tpu.memory_space<vmem>>, vector<128x64xbf16>
    %cst = arith.constant dense<0.000000e+00> : vector<64x128xf32>
    %2 = tpu.matmul %0, %1, %cst {dimension_numbers = #tpu.dot_dimension_numbers<[1], [1], [0], [0], [0, 0, 1, 0], [], []>} : vector<64x64xbf16>, vector<128x64xbf16>, vector<64x128xf32> -> vector<64x128xf32>
    %c0_3 = arith.constant 0 : index
    %c0_4 = arith.constant 0 : index
    %3 = vector.load %arg3[%c0_3, %c0_4] : memref<64x1xf32, #tpu.memory_space<vmem>>, vector<64x1xf32>
    %4 = vector.broadcast %3 : vector<64x1xf32> to vector<64x128xf32>
    %5 = arith.addf %2, %4 : vector<64x128xf32>
    %cst_5 = arith.constant 0.000000e+00 : f32
    %6 = vector.broadcast %cst_5 : f32 to vector<64x128xf32>
    %7 = arith.maximumf %5, %6 : vector<64x128xf32>
    %c0_6 = arith.constant 0 : index
    %c0_7 = arith.constant 0 : index
    %8 = vector.load %arg4[%c0_6, %c0_7] : memref<64x64xbf16, #tpu.memory_space<vmem>>, vector<64x64xbf16>
    %9 = arith.truncf %7 : vector<64x128xf32> to vector<64x128xbf16>
    %cst_8 = arith.constant dense<0.000000e+00> : vector<64x128xf32>
    %10 = tpu.matmul %8, %9, %cst_8 {dimension_numbers = #tpu.dot_dimension_numbers<[1], [0], [0], [1], [0, 0, 1, 1], [], []>} : vector<64x64xbf16>, vector<64x128xbf16>, vector<64x128xf32> -> vector<64x128xf32>
    %c0_9 = arith.constant 0 : index
    %c0_10 = arith.constant 0 : index
    %11 = vector.load %arg5[%c0_9, %c0_10] : memref<64x1xf32, #tpu.memory_space<vmem>>, vector<64x1xf32>
    %12 = vector.broadcast %11 : vector<64x1xf32> to vector<64x128xf32>
    %13 = arith.addf %10, %12 : vector<64x128xf32>
    %cst_11 = arith.constant 0.000000e+00 : f32
    %14 = vector.broadcast %cst_11 : f32 to vector<64x128xf32>
    %15 = arith.maximumf %13, %14 : vector<64x128xf32>
    %c0_12 = arith.constant 0 : index
    %c0_13 = arith.constant 0 : index
    %16 = vector.load %arg6[%c0_12, %c0_13] : memref<64x1xf32, #tpu.memory_space<vmem>>, vector<64x1xf32>
    %17 = vector.broadcast %16 : vector<64x1xf32> to vector<64x128xf32>
    %18 = arith.mulf %15, %17 : vector<64x128xf32>
    %cst_14 = arith.constant dense<0.000000e+00> : vector<128xf32>
    %19 = vector.multi_reduction <add>, %18, %cst_14 [0] : vector<64x128xf32> to vector<128xf32>
    %20 = vector.shape_cast %19 : vector<128xf32> to vector<1x128xf32>
    %c0_15 = arith.constant 0 : index
    %c0_16 = arith.constant 0 : index
    %21 = memref.load %arg7[%c0_15, %c0_16] : memref<1x1xf32, #tpu.memory_space<smem>>
    %22 = vector.broadcast %21 : f32 to vector<1x128xf32>
    %23 = arith.addf %20, %22 : vector<1x128xf32>
    %c0_17 = arith.constant 0 : index
    %c0_18 = arith.constant 0 : index
    %24 = vector.load %arg8[%c0_17, %c0_18] : memref<1x128xf32, #tpu.memory_space<vmem>>, vector<1x128xf32>
    tpu.vector_store %arg8[%c0_17, %c0_18], %23 {strides = array<i32>} : memref<1x128xf32, #tpu.memory_space<vmem>>, vector<1x128xf32>,
    return
  }
  func.func @transform_0(%arg0: i32) -> (i32, i32) {
    %c0_i32 = arith.constant 0 : i32
    %c0_i32_0 = arith.constant 0 : i32
    return %arg0, %c0_i32 : i32, i32
  }
  func.func @transform_1(%arg0: i32) -> (i32, i32) {
    %c0_i32 = arith.constant 0 : i32
    %c0_i32_0 = arith.constant 0 : i32
    %c0_i32_1 = arith.constant 0 : i32
    return %c0_i32, %c0_i32_0 : i32, i32
  }
  func.func @transform_2(%arg0: i32) -> (i32, i32) {
    %c0_i32 = arith.constant 0 : i32
    %c0_i32_0 = arith.constant 0 : i32
    %c0_i32_1 = arith.constant 0 : i32
    return %c0_i32, %c0_i32_0 : i32, i32
  }
  func.func @transform_3(%arg0: i32) -> (i32, i32) {
    %c0_i32 = arith.constant 0 : i32
    %c0_i32_0 = arith.constant 0 : i32
    %c0_i32_1 = arith.constant 0 : i32
    return %c0_i32, %c0_i32_0 : i32, i32
  }
  func.func @transform_4(%arg0: i32) -> (i32, i32) {
    %c0_i32 = arith.constant 0 : i32
    %c0_i32_0 = arith.constant 0 : i32
    %c0_i32_1 = arith.constant 0 : i32
    return %c0_i32, %c0_i32_0 : i32, i32
  }
  func.func @transform_5(%arg0: i32) -> (i32, i32) {
    %c0_i32 = arith.constant 0 : i32
    %c0_i32_0 = arith.constant 0 : i32
    %c0_i32_1 = arith.constant 0 : i32
    return %c0_i32, %c0_i32_0 : i32, i32
  }
  func.func @transform_6(%arg0: i32) -> (i32, i32) {
    %c0_i32 = arith.constant 0 : i32
    %c0_i32_0 = arith.constant 0 : i32
    %c0_i32_1 = arith.constant 0 : i32
    return %c0_i32, %c0_i32_0 : i32, i32
  }
  func.func @transform_7(%arg0: i32) -> (i32, i32) {
    %c0_i32 = arith.constant 0 : i32
    %c0_i32_0 = arith.constant 0 : i32
    return %c0_i32, %arg0 : i32, i32
  }
}

</mosaic_0001>

<bundles_post_ra>
// kernel: tpu_custom_call.1
= control target key start
LH: loop header
LB: loop body
LE: loop exit
PB: predicated region body
PF: predicated region fallthrough
CT: control target
= control target key end

     0   :  { %vm161_vm0 = vcmask 523264   ;;  %v659_v3 = vmov 0   ;;  %s860_s0 = inlined_call_operand.vmem [shape: bf16[128,64], index: 0, kind: input, shape index: {}]   ;;  %s861_s1 = inlined_call_operand.vmem [shape: bf16[64,64], index: 1, kind: input, shape index: {}]   ;;  %s862_s2 = inlined_call_operand.vmem [shape: f32[64,1], index: 2, kind: input, shape index: {}]   ;;  %s863_s3 = inlined_call_operand.vmem [shape: bf16[64,64], index: 3, kind: input, shape index: {}]   ;;  %s864_s4 = inlined_call_operand.vmem [shape: f32[64,1], index: 4, kind: input, shape index: {}]   ;;  %s865_s5 = inlined_call_operand.vmem [shape: f32[64,1], index: 5, kind: input, shape index: {}]   ;;  %s866_s6 = inlined_call_operand.<no memory space> [shape: f32[1,1], index: 6, kind: input, shape index: {}]   ;;  %s867_s7 = inlined_call_operand.hbm [shape: f32[1,128], index: 7, kind: output, shape index: {}]  }
   0x1   :  { %v619_v0 = vld [vmem:[%s860_s0] sm:$0xff]   ;;  %v620_v1 = vld [vmem:[%s860_s0 + $0x8] sm:$0xff]   ;;  %617 = vset.pattern.permute.xlu0 %v659_v3  ;;  %618 = vset.pattern.permute.xlu1 %v659_v3  ;;  %v621_v4 = vld [vmem:[%s860_s0 + $0x10] sm:$0xff]  }
   0x2   :  { %607 = vmatprep.subr.msk.bf16.mxu0 %vm161_vm0, %v619_v0  ;;  %v175_v2 = vsel %vm161_vm0, %v619_v0, 0  ;;  %v178_v5 = vsel %vm161_vm0, %v620_v1, 0  ;;  %v627_v6 = vld [vmem:[%s861_s1] sm:$0xff]   ;;  %v55_v8 = vld [vmem:[%s862_s2 + $0x10] sm:$0xff]  ;;  %v54_v9 = vld [vmem:[%s862_s2 + $0x8] sm:$0xff]  ;;  %v181_v11 = vsel %vm161_vm0, %v621_v4, 0 }
   0x3   :  { %568 = vmatpush3.bf16.xpose.msra.mxu0 %v175_v2  ;;  %583 = vmatprep.mubr.msk.bf16.mxu0 %vm161_vm0, %v627_v6  ;;  %v53_v7 = vld [vmem:[%s862_s2] sm:$0xff]  ;;  %v56_v10 = vld [vmem:[%s862_s2 + $0x18] sm:$0xff]  ;;  %v58_v14 = vld [vmem:[%s862_s2 + $0x28] sm:$0xff] }
   0x4   :  { %608 = vmatprep.subr.msk.bf16.mxu0 %vm161_vm0, %v620_v1  ;;  %63 = vperm.xlu0 %617, %v53_v7   ;;  %v622_v12 = vld [vmem:[%s860_s0 + $0x18] sm:$0xff]   ;;  %v57_v13 = vld [vmem:[%s862_s2 + $0x20] sm:$0xff]  ;;  %v59_v15 = vld [vmem:[%s862_s2 + $0x30] sm:$0xff] }
   0x5   :  { %73 = vperm.xlu1 %618, %v55_v8   ;;  %v60_v16 = vld [vmem:[%s862_s2 + $0x38] sm:$0xff] }
   0x8   :  { %68 = vperm.xlu0 %617, %v54_v9  }
   0x9   :  { %78 = vperm.xlu1 %618, %v56_v10  }
   0xb   :  { %570 = vmatpush3.bf16.xpose.msra.mxu0 %v178_v5 }
   0xc   :  { %609 = vmatprep.subr.msk.bf16.mxu0 %vm161_vm0, %v621_v4  ;;  %83 = vperm.xlu0 %617, %v57_v13  }
   0xd   :  { %88 = vperm.xlu1 %618, %v58_v14  }
  0x13   :  { %572 = vmatpush3.bf16.xpose.msra.mxu0 %v181_v11 }
  0x14   :  { %610 = vmatprep.subr.msk.bf16.mxu0 %vm161_vm0, %v622_v12 }
  0x15   :  { %13 = vsyncpa [#allocation4], 0  ;;  %v184_v17 = vsel %vm161_vm0, %v622_v12, 0  ;;  %v623_v18 = vld [vmem:[%s860_s0 + $0x20] sm:$0xff]   ;;  %93 = vperm.xlu0 %617, %v59_v15   ;;  %98 = vperm.xlu1 %618, %v60_v16   ;;  %v284_v20 = vld [vmem:[%s864_s4 + $0x8] sm:$0xff]  ;;  %s660_s30 = smov [#allocation3]  }
  0x16   :  { %v283_v19 = vld [vmem:[%s864_s4] sm:$0xff]  ;;  %v285_v21 = vld [vmem:[%s864_s4 + $0x10] sm:$0xff]  ;;  %v286_v22 = vld [vmem:[%s864_s4 + $0x18] sm:$0xff]  ;;  %v187_v23 = vsel %vm161_vm0, %v623_v18, 0  ;;  %s515_s8 = sshll.u32 %s660_s30, 4  ;;  %s516_s8 = int_to_ptr.vmem [resolvable:$true] %s515_s8 }
  0x17   :  { %v624_v24 = vld [vmem:[%s860_s0 + $0x28] sm:$0xff]   ;;  %v436_v25 = vld [vmem:[%s865_s5] sm:$0xff]  ;;  %v438_v28 = vld [vmem:[%s865_s5 + $0x10] sm:$0xff]  ;;  %s635_s9 = scalar_lea.vmem %s516_s8, 16  ;;  %s639_s2 = scalar_lea.vmem %s516_s8, 32 }
  0x18   :  { %v437_v26 = vld [vmem:[%s865_s5 + $0x8] sm:$0xff]  ;;  %v287_v27 = vld [vmem:[%s864_s4 + $0x20] sm:$0xff]  ;;  %v190_v29 = vsel %vm161_vm0, %v624_v24, 0  ;;  %v625_v30 = vld [vmem:[%s860_s0 + $0x30] sm:$0xff]   ;;  %p636_p0 = scmp.ne.s32.totalorder %s516_s8, %s635_s9  ;;  %p640_p1 = scmp.lt.s32.totalorder %s516_s8, %s516_s8 }
  0x19   :  { %293 = vperm.xlu0 %617, %v283_v19   ;;  %298 = vperm.xlu1 %618, %v284_v20   ;;  %v288_v31 = vld [vmem:[%s864_s4 + $0x28] sm:$0xff]  ;;  %v439_v32 = vld [vmem:[%s865_s5 + $0x18] sm:$0xff]  ;;  %v289_v33 = vld [vmem:[%s864_s4 + $0x30] sm:$0xff]  ;;  %v193_v35 = vsel %vm161_vm0, %v625_v30, 0  ;;  %p641_p2 = scmp.lt.s32.totalorder %s639_s2, %s635_s9 }
  0x1a   :  { %v440_v34 = vld [vmem:[%s865_s5 + $0x20] sm:$0xff]  ;;  %v626_v36 = vld [vmem:[%s860_s0 + $0x38] sm:$0xff]   ;;  %v441_v38 = vld [vmem:[%s865_s5 + $0x28] sm:$0xff] }
  0x1b   :  { %574 = vmatpush3.bf16.xpose.msra.mxu0 %v184_v17  ;;  %v290_v37 = vld [vmem:[%s864_s4 + $0x38] sm:$0xff]  ;;  %v442_v39 = vld [vmem:[%s865_s5 + $0x30] sm:$0xff]  ;;  %v196_v41 = vsel %vm161_vm0, %v626_v36, 0  ;;  %v628_v42 = vld [vmem:[%s861_s1 + $0x8] sm:$0xff]   ;;  %p642_p3 = por %p641_p2, %p640_p1 }
  0x1c   :  { %611 = vmatprep.subr.msk.bf16.mxu0 %vm161_vm0, %v623_v18  ;;  %v443_v40 = vld [vmem:[%s865_s5 + $0x38] sm:$0xff]  ;;  %v629_v43 = vld [vmem:[%s861_s1 + $0x10] sm:$0xff]   ;;  %v631_v45 = vld [vmem:[%s863_s3] sm:$0xff]  }
  0x1d   :  { %303 = vperm.xlu0 %617, %v285_v21   ;;  %308 = vperm.xlu1 %618, %v286_v22   ;;  %v630_v44 = vld [vmem:[%s861_s1 + $0x18] sm:$0xff]   ;;  %v632_v18 = vld [vmem:[%s863_s3 + $0x8] sm:$0xff]   ;;  %v633_v19 = vld [vmem:[%s863_s3 + $0x10] sm:$0xff]   ;;  %p643_p4 = pnand %p642_p3, %p636_p0 }
  0x1e   :  { %599 = vmatprep.mubr.msk.bf16.mxu1 %vm161_vm0, %v631_v45  ;;  %v634_v20 = vld [vmem:[%s863_s3 + $0x18] sm:$0xff]  }
  0x21   :  { %446 = vperm.xlu0 %617, %v436_v25   ;;  %451 = vperm.xlu1 %618, %v437_v26  }
  0x23   :  { %576 = vmatpush3.bf16.xpose.msra.mxu0 %v187_v23 }
  0x24   :  { %612 = vmatprep.subr.msk.bf16.mxu0 %vm161_vm0, %v624_v24 }
  0x25   :  { %313 = vperm.xlu0 %617, %v287_v27   ;;  %456 = vperm.xlu1 %618, %v438_v28  }
  0x29   :  { %318 = vperm.xlu0 %617, %v288_v31   ;;  %461 = vperm.xlu1 %618, %v439_v32  }
  0x2b   :  { %578 = vmatpush3.bf16.xpose.msra.mxu0 %v190_v29 }
  0x2c   :  { %613 = vmatprep.subr.msk.bf16.mxu0 %vm161_vm0, %v625_v30 }
  0x2d   :  { %323 = vperm.xlu0 %617, %v289_v33   ;;  %466 = vperm.xlu1 %618, %v440_v34  }
  0x31   :  { %328 = vperm.xlu0 %617, %v290_v37   ;;  %471 = vperm.xlu1 %618, %v441_v38  }
  0x33   :  { %580 = vmatpush3.bf16.xpose.msra.mxu0 %v193_v35 }
  0x34   :  { %614 = vmatprep.subr.msk.bf16.mxu0 %vm161_vm0, %v626_v36 }
  0x35   :  { %476 = vperm.xlu0 %617, %v442_v39   ;;  %481 = vperm.xlu1 %618, %v443_v40  }
  0x3b   :  { %582 = vmatpush3.bf16.xpose.msra.mxu0 %v196_v41 }
  0x42   :  { %584 = vmatmul.mubr.msk.bf16.vlgmr.msra.gmra.mrb[0].mxu0 %vm161_vm0, %v628_v42 }
  0x43   :  { %587 = vmatprep.mubr.msk.bf16.mxu0 %vm161_vm0, %v629_v43 }
  0x4a   :  { %588 = vmatmul.mubr.msk.bf16.gmra.mrb[4].mxu0 %vm161_vm0, %v630_v44 }
  0x83   :  { %v64_v46 = vpop.permute.xlu0 %63 }
  0x84   :  { %v74_v47 = vpop.permute.xlu1 %73 }
  0x87   :  { %v69_v48 = vpop.permute.xlu0 %68 }
  0x88   :  { %v79_v49 = vpop.permute.xlu1 %78 }
  0x8b   :  { %v84_v53 = vpop.permute.xlu0 %83 }
  0x8c   :  { %v89_v58 = vpop.permute.xlu1 %88 }
  0x94   :  { %v94_v1 = vpop.permute.xlu0 %93  ;;  %v99_v6 = vpop.permute.xlu1 %98 }
  0x98   :  { %v294_v21 = vpop.permute.xlu0 %293  ;;  %v299_v22 = vpop.permute.xlu1 %298 }
  0x9c   :  { %v304_v23 = vpop.permute.xlu0 %303  ;;  %v309_v24 = vpop.permute.xlu1 %308 }
  0xa0   :  { %v447_v25 = vpop.permute.xlu0 %446  ;;  %v452_v26 = vpop.permute.xlu1 %451 }
  0xa4   :  { %v314_v27 = vpop.permute.xlu0 %313  ;;  %v457_v28 = vpop.permute.xlu1 %456 }
  0xa8   :  { %v319_v29 = vpop.permute.xlu0 %318  ;;  %v462_v31 = vpop.permute.xlu1 %461 }
  0xac   :  { %v324_v40 = vpop.permute.xlu0 %323  ;;  %v467_v43 = vpop.permute.xlu1 %466 }
 0x115   :  { %v585_v50 = vpop.f32.mrb[0].mxu0 }
 0x116   :  { %v241_v51 = vadd.f32 %v585_v50, %v74_v47  ;;  %v232_v52 = vpop.f32.mrb[1].mxu0 }
 0x117   :  { %v233_v54 = vadd.f32 %v232_v52, %v64_v46  ;;  %v586_v55 = vpop.f32.mrb[2].mxu0 }
 0x118   :  { %v244_v56 = vadd.f32 %v586_v55, %v79_v49  ;;  %v235_v57 = vpop.f32.mrb[3].mxu0  ;;  %v265_v60 = vmax.f32 %v241_v51, 0.0 }
 0x119   :  { %v236_v59 = vadd.f32 %v235_v57, %v69_v48  ;;  %v263_v62 = vmax.f32 %v233_v54, 0.0  ;;  %v329_v54 = vpop.permute.xlu0 %328 }
 0x11a   :  { %v266_v61 = vmax.f32 %v244_v56, 0.0 }
 0x11b   :  { %v264_v63 = vmax.f32 %v236_v59, 0.0 }
 0x11c   :  { %v280_v0 = vpack.c.bf16 %v266_v61, %v265_v60  ;;  %v472_v61 = vpop.permute.xlu1 %471 }
 0x11d   :  { %v589_v2 = vpop.f32.mrb[4].mxu0  ;;  %v279_v3 = vpack.c.bf16 %v264_v63, %v263_v62 }
 0x11e   :  { %v257_v4 = vadd.f32 %v589_v2, %v94_v1  ;;  %v248_v5 = vpop.f32.mrb[5].mxu0 }
 0x11f   :  { %v249_v7 = vadd.f32 %v248_v5, %v84_v53  ;;  %v590_v8 = vpop.f32.mrb[6].mxu0  ;;  %591 = vmatprep.subr.bf16.mxu1 %v279_v3  ;;  %v477_v5 = vpop.permute.xlu0 %476 }
 0x120   :  { %v260_v9 = vadd.f32 %v590_v8, %v99_v6  ;;  %v251_v10 = vpop.f32.mrb[7].mxu0  ;;  %592 = vmatpush3.bf16.msra.mxu1 %v279_v3  ;;  %v269_v12 = vmax.f32 %v257_v4, 0.0  ;;  %v482_v8 = vpop.permute.xlu1 %481 }
 0x121   :  { %v252_v11 = vadd.f32 %v251_v10, %v89_v58  ;;  %593 = vmatprep.subr.bf16.mxu1 %v280_v0  ;;  %v267_v14 = vmax.f32 %v249_v7, 0.0 }
 0x122   :  { %v270_v13 = vmax.f32 %v260_v9, 0.0 }
 0x123   :  { %v268_v15 = vmax.f32 %v252_v11, 0.0 }
 0x124   :  { %v282_v16 = vpack.c.bf16 %v270_v13, %v269_v12  ;;  %594 = vmatpush3.bf16.msra.mxu1 %v280_v0 }
 0x125   :  { %v281_v17 = vpack.c.bf16 %v268_v15, %v267_v14 }
 0x127   :  { %595 = vmatprep.subr.bf16.mxu1 %v281_v17 }
 0x128   :  { %596 = vmatpush3.bf16.msra.mxu1 %v281_v17  ;;  %v506_v17 = vstv %s866_s6 }
 0x129   :  { %597 = vmatprep.subr.bf16.mxu1 %v282_v16 }
 0x12c   :  { %598 = vmatpush3.bf16.msra.mxu1 %v282_v16 }
 0x12f   :  { %600 = vmatmul.mubr.msk.bf16.vlgmr.msra.gmra.mrb[0].mxu1 %vm161_vm0, %v632_v18 }
 0x130   :  { %603 = vmatprep.mubr.msk.bf16.mxu1 %vm161_vm0, %v633_v19 }
 0x137   :  { %604 = vmatmul.mubr.msk.bf16.gmra.mrb[4].mxu1 %vm161_vm0, %v634_v20 }
 0x202   :  { %v601_v30 = vpop.f32.mrb[0].mxu1 }
 0x203   :  { %v397_v32 = vpop.f32.mrb[1].mxu1  ;;  %v406_v33 = vadd.f32 %v601_v30, %v304_v23 }
 0x204   :  { %v398_v34 = vadd.f32 %v397_v32, %v294_v21  ;;  %v602_v35 = vpop.f32.mrb[2].mxu1 }
 0x205   :  { %v409_v36 = vadd.f32 %v602_v35, %v309_v24  ;;  %v400_v37 = vpop.f32.mrb[3].mxu1  ;;  %v430_v41 = vmax.f32 %v406_v33, 0.0 }
 0x206   :  { %v428_v38 = vmax.f32 %v398_v34, 0.0  ;;  %v401_v39 = vadd.f32 %v400_v37, %v299_v22 }
 0x207   :  { %v431_v44 = vmax.f32 %v409_v36, 0.0  ;;  %v486_v49 = vmul.f32 %v457_v28, %v430_v41 }
 0x208   :  { %v429_v42 = vmax.f32 %v401_v39, 0.0  ;;  %v484_v45 = vmul.f32 %v447_v25, %v428_v38 }
 0x209   :  { %v487_v55 = vmul.f32 %v462_v31, %v431_v44 }
 0x20a   :  { %v485_v46 = vmul.f32 %v452_v26, %v429_v42  ;;  %v605_v47 = vpop.f32.mrb[4].mxu1 }
 0x20b   :  { %v413_v48 = vpop.f32.mrb[5].mxu1  ;;  %v422_v51 = vadd.f32 %v605_v47, %v324_v40 }
 0x20c   :  { %v492_v50 = vadd.f32 %v485_v46, %v484_v45  ;;  %v414_v52 = vadd.f32 %v413_v48, %v314_v27  ;;  %v606_v53 = vpop.f32.mrb[6].mxu1 }
 0x20d   :  { %v416_v56 = vpop.f32.mrb[7].mxu1  ;;  %v425_v59 = vadd.f32 %v606_v53, %v329_v54  ;;  %v434_v62 = vmax.f32 %v422_v51, 0.0 }
 0x20e   :  { %v493_v57 = vadd.f32 %v492_v50, %v486_v49  ;;  %v432_v58 = vmax.f32 %v414_v52, 0.0  ;;  %v417_v60 = vadd.f32 %v416_v56, %v319_v29 }
 0x20f   :  { %v435_v3 = vmax.f32 %v425_v59, 0.0  ;;  %v490_v6 = vmul.f32 %v477_v5, %v434_v62 }
 0x210   :  { %v488_v63 = vmul.f32 %v467_v43, %v432_v58  ;;  %v494_v0 = vadd.f32 %v493_v57, %v487_v55  ;;  %v433_v1 = vmax.f32 %v417_v60, 0.0 }
 0x211   :  { %v491_v9 = vmul.f32 %v482_v8, %v435_v3 }
 0x212   :  { %v495_v2 = vadd.f32 %v494_v0, %v488_v63  ;;  %v489_v4 = vmul.f32 %v472_v61, %v433_v1 }
 0x214   :  { %v496_v7 = vadd.f32 %v495_v2, %v489_v4 }
 0x216   :  { %v497_v10 = vadd.f32 %v496_v7, %v490_v6 }
 0x218   :  { %v498_v11 = vadd.f32 %v497_v10, %v491_v9 }
 0x21a   :  { %v499_v12 = vrot.slane %v498_v11, 4 }
 0x21c   :  { %v500_v13 = vadd.f32 %v499_v12, %v498_v11 }
 0x21e   :  { %v501_v14 = vrot.slane %v500_v13, 2 }
 0x220   :  { %v502_v15 = vadd.f32 %v501_v14, %v500_v13 }
 0x222   :  { %v503_v16 = vrot.slane %v502_v15, 1 }
 0x224   :  { %v504_v18 = vadd.f32 %v503_v16, %v502_v15 }
 0x226   :  { %v507_v19 = vadd.f32 %v506_v17, %v504_v18 }
 0x228   :  { %508 = vst [vmem:[#allocation3] sm:$0x1] %v507_v19 }
 0x229   :  { %646 = shalt.err (!%p643_p4)
}
 0x22a   :  { %s647_s12 = scalar_lea.hbm %s867_s7, 16 }
 0x22b   :  { %p648_p5 = scmp.ne.s32.totalorder %s867_s7, %s647_s12  ;;  %p651_p6 = scmp.lt.u32.totalorder %s647_s12, %s867_s7 }
 0x22d   :  { %p653_p7 = pnand %p651_p6, %p648_p5 }
 0x22f   :  { %656 = shalt.err (!%p653_p7)
}
 0x230   :  { %518 = dma.vmem_to_hbm [thread:$0]  %s516_s8, 16, %s867_s7, [#allocation4]  }
 0x231   :  { %657 = dma.done.wait [#allocation4], 16  }
 0x232   :  { %658 = vsyncadd [#allocation4], 4294967280 }
 0x233   :  { %522 = vsyncpa [#allocation4], 1 }

</bundles_post_ra>
